<compile_context>
chip_gen: v6e
topology: v6e:2x2x1
jax: 0.10.0
libtpu: 0.0.40
codegen_flags: <defaults>
</compile_context>

<pallas_src>
import functools

import jax
import jax.numpy as jnp
from jax.experimental import pallas as pl
from jax.experimental.pallas import tpu as pltpu


def _dnn_kernel(x_ref, w1_ref, b1_ref, w2_ref, b2_ref, o_ref, *, b2_scalar):
    # x_ref : (in_dim, tile_b)  bf16/f32  -- batch on the lane axis
    # w1_ref: (hidden, in_dim)  bf16/f32  -- PyTorch nn.Linear weight layout
    # b1_ref: (hidden, 1)       f32
    # w2_ref: (hidden, 1) f32 if b2_scalar else (out_dim, hidden) f32
    # b2_ref: (1, 1) f32 in SMEM if b2_scalar else (out_dim, 1) f32 in VMEM
    # o_ref : (out_dim, tile_b) f32       -- lane-dense output row(s)

    # fc1 on the MXU: (hidden, in) @ (in, tile_b) -> (hidden, tile_b), f32 accumulation.
    h = jnp.dot(w1_ref[...], x_ref[...], preferred_element_type=jnp.float32)
    # Bias + ReLU in f32 on the VPU (lane-broadcast of the (hidden, 1) bias column).
    h = jnp.maximum(h + b1_ref[...], 0.0)
    # Dropout(p=0.1): inference-mode identity.
    # TODO(synk): training-mode dropout (pltpu.prng_seed + prng_random_bits Bernoulli
    #             mask, scaled by 1/(1-p)) is not emitted here.
    if b2_scalar:
        # out_dim == 1: VPU multiply + sublane reduction instead of an N=1 MXU matmul
        # (avoids the lane-sparse MRF/MRB result column).  b2 is an SMEM scalar.
        z = jnp.sum(h * w2_ref[...], axis=0, keepdims=True) + b2_ref[0, 0]
    else:
        z = jnp.dot(w2_ref[...], h, preferred_element_type=jnp.float32) + b2_ref[...]
    o_ref[...] = jax.nn.sigmoid(z).astype(o_ref.dtype)


def dnn_forward(x, w1, b1, w2, b2, *, tile_b=8192, compute_dtype=jnp.bfloat16):
    """Forward pass of DNN.

    Args (PyTorch nn.Linear layouts):
      x : (B, input_size)
      w1: (hidden, input_size),  b1: (hidden,)
      w2: (out_dim, hidden),     b2: (out_dim,)
    Returns: (B, out_dim) float32.
    """
    B, in_dim = x.shape
    hidden = w1.shape[0]
    out_dim = w2.shape[0]

    # Layout plumbing (ideally x arrives already transposed / bf16 from upstream):
    # batch on the lane axis, MXU operands in compute_dtype, elementwise params in f32.
    xt = x.T.astype(compute_dtype)                          # (in_dim, B)
    w1_k = w1.astype(compute_dtype)                         # (hidden, in_dim)
    b1_k = b1.reshape(hidden, 1).astype(jnp.float32)

    b2_scalar = out_dim == 1
    if b2_scalar:
        w2_k = w2.reshape(hidden, 1).astype(jnp.float32)    # column for the VPU reduce
        b2_k = b2.reshape(1, 1).astype(jnp.float32)         # scalar, lives in SMEM
        b2_space = pltpu.MemorySpace.SMEM
    else:
        w2_k = w2.astype(jnp.float32)                       # (out_dim, hidden)
        b2_k = b2.reshape(out_dim, 1).astype(jnp.float32)
        b2_space = pltpu.MemorySpace.VMEM

    kernel = functools.partial(_dnn_kernel, b2_scalar=b2_scalar)

    if B <= tile_b:
        # Small problems: gridless call, everything VMEM-resident (scalar bias in SMEM).
        # At toy sizes (e.g. B=8) this is pure launch/DMA overhead — the real lever is
        # batching more rows per call (tiled path below) or letting XLA fuse it.
        out_t = pl.pallas_call(
            kernel,
            out_shape=jax.ShapeDtypeStruct((out_dim, B), jnp.float32),
            in_specs=[
                pl.BlockSpec(memory_space=pltpu.MemorySpace.VMEM),   # x^T
                pl.BlockSpec(memory_space=pltpu.MemorySpace.VMEM),   # w1
                pl.BlockSpec(memory_space=pltpu.MemorySpace.VMEM),   # b1
                pl.BlockSpec(memory_space=pltpu.MemorySpace.VMEM),   # w2
                pl.BlockSpec(memory_space=b2_space),                 # b2
            ],
            out_specs=pl.BlockSpec(memory_space=pltpu.MemorySpace.VMEM),
        )(xt, w1_k, b1_k, w2_k, b2_k)
    else:
        # Large B: tile only the batch (lane) axis.  Weights/biases use a constant
        # index_map so they are DMA'd once and stay VMEM-resident; the x^T and output
        # tiles are auto double-buffered.  Since B > tile_b here, the grid always has
        # >= 2 steps, so the "parallel" batch axis can shard across v7x's 2 TensorCores.
        # (Remainder tiles only waste compute on padded lanes; writeback stays correct.)
        grid = (pl.cdiv(B, tile_b),)
        out_t = pl.pallas_call(
            kernel,
            out_shape=jax.ShapeDtypeStruct((out_dim, B), jnp.float32),
            grid=grid,
            in_specs=[
                pl.BlockSpec((in_dim, tile_b), lambda i: (0, i)),                   # x^T
                pl.BlockSpec((hidden, in_dim), lambda i: (0, 0)),                   # w1
                pl.BlockSpec((hidden, 1), lambda i: (0, 0)),                        # b1
                pl.BlockSpec(w2_k.shape, lambda i: (0, 0)),                         # w2
                pl.BlockSpec(b2_k.shape, lambda i: (0, 0), memory_space=b2_space),  # b2
            ],
            out_specs=pl.BlockSpec((out_dim, tile_b), lambda i: (0, i)),
            compiler_params=pltpu.CompilerParams(
                dimension_semantics=("parallel",)
            ),
        )(xt, w1_k, b1_k, w2_k, b2_k)

    # Lane-dense (out_dim, B) slab back to the module's (B, out_dim) layout.
    return out_t.T


def dnn_reference(x, w1, b1, w2, b2):
    # Pure-JAX reference in f32, PyTorch nn.Linear semantics (x @ W.T + b).
    h = jnp.maximum(x @ w1.T + b1, 0.0)
    return jax.nn.sigmoid(h @ w2.T + b2)


if __name__ == "__main__":
    # Shapes consistent with DNN(input_size=32, output_size=1, hidden_size=64)
    B, input_size, hidden_size, output_size = 8, 32, 64, 1

    key = jax.random.PRNGKey(0)
    kx, k1, kb1, k2, kb2, kx2 = jax.random.split(key, 6)

    x = jax.random.normal(kx, (B, input_size), dtype=jnp.float32)

    # Deterministic parameter init (uniform, roughly nn.Linear's scale), PyTorch layouts.
    bound1 = 1.0 / (input_size ** 0.5)
    w1 = jax.random.uniform(k1, (hidden_size, input_size), jnp.float32, -bound1, bound1)
    b1 = jax.random.uniform(kb1, (hidden_size,), jnp.float32, -bound1, bound1)
    bound2 = 1.0 / (hidden_size ** 0.5)
    w2 = jax.random.uniform(k2, (output_size, hidden_size), jnp.float32, -bound2, bound2)
    b2 = jax.random.uniform(kb2, (output_size,), jnp.float32, -bound2, bound2)

    ref = dnn_reference(x, w1, b1, w2, b2)

    # --- small / gridless path, full-precision compute (tight structural check) ---
    out_f32 = dnn_forward(x, w1, b1, w2, b2, compute_dtype=jnp.float32)
    out_f32 = jax.block_until_ready(out_f32)
    assert out_f32.shape == (B, output_size)
    assert jnp.allclose(out_f32, ref, atol=1e-5, rtol=1e-5)

    # --- small / gridless path, default bf16 MXU inputs (loosened tolerance) ---
    out_small = dnn_forward(x, w1, b1, w2, b2)
    out_small = jax.block_until_ready(out_small)
    assert out_small.shape == (B, output_size)
    assert jnp.allclose(out_small, ref, atol=2e-2)

    # --- batch-tiled path: 2 grid steps of 8192 rows (v7x gets one per TensorCore) ---
    B_big, tile_b = 16384, 8192
    x_big = jax.random.normal(kx2, (B_big, input_size), dtype=jnp.float32)
    out_big = dnn_forward(x_big, w1, b1, w2, b2, tile_b=tile_b)
    out_big = jax.block_until_ready(out_big)
    ref_big = dnn_reference(x_big, w1, b1, w2, b2)
    assert out_big.shape == (B_big, output_size)
    assert jnp.allclose(out_big, ref_big, atol=2e-2)

    print("KERNEL_OK")
</pallas_src>

<mosaic_0001>
module attributes {stable_mosaic.version = 11 : i64} {
  func.func @_dnn_kernel(%arg0: memref<32x8xf32, #tpu.memory_space<vmem>>, %arg1: memref<64x32xf32, #tpu.memory_space<vmem>>, %arg2: memref<64x1xf32, #tpu.memory_space<vmem>>, %arg3: memref<64x1xf32, #tpu.memory_space<vmem>>, %arg4: memref<1x1xf32, #tpu.memory_space<smem>>, %arg5: memref<1x8xf32, #tpu.memory_space<vmem>>) attributes {dimension_semantics = [], scalar_prefetch = 0 : i64, scratch_operands = 0 : i64, tpu.core_type = #tpu.core_type<tc>} {
    %c0 = arith.constant 0 : index
    %c0_0 = arith.constant 0 : index
    %0 = vector.load %arg1[%c0, %c0_0] : memref<64x32xf32, #tpu.memory_space<vmem>>, vector<64x32xf32>
    %c0_1 = arith.constant 0 : index
    %c0_2 = arith.constant 0 : index
    %1 = vector.load %arg0[%c0_1, %c0_2] : memref<32x8xf32, #tpu.memory_space<vmem>>, vector<32x8xf32>
    %cst = arith.constant dense<0.000000e+00> : vector<64x8xf32>
    %2 = tpu.matmul %0, %1, %cst {dimension_numbers = #tpu.dot_dimension_numbers<[1], [0], [0], [1], [0, 0, 1, 1], [], []>} : vector<64x32xf32>, vector<32x8xf32>, vector<64x8xf32> -> vector<64x8xf32>
    %c0_3 = arith.constant 0 : index
    %c0_4 = arith.constant 0 : index
    %3 = vector.load %arg2[%c0_3, %c0_4] : memref<64x1xf32, #tpu.memory_space<vmem>>, vector<64x1xf32>
    %4 = vector.broadcast %3 : vector<64x1xf32> to vector<64x8xf32>
    %5 = arith.addf %2, %4 : vector<64x8xf32>
    %cst_5 = arith.constant 0.000000e+00 : f32
    %6 = vector.broadcast %cst_5 : f32 to vector<64x8xf32>
    %7 = arith.maximumf %5, %6 : vector<64x8xf32>
    %c0_6 = arith.constant 0 : index
    %c0_7 = arith.constant 0 : index
    %8 = vector.load %arg3[%c0_6, %c0_7] : memref<64x1xf32, #tpu.memory_space<vmem>>, vector<64x1xf32>
    %9 = vector.broadcast %8 : vector<64x1xf32> to vector<64x8xf32>
    %10 = arith.mulf %7, %9 : vector<64x8xf32>
    %cst_8 = arith.constant dense<0.000000e+00> : vector<8xf32>
    %11 = vector.multi_reduction <add>, %10, %cst_8 [0] : vector<64x8xf32> to vector<8xf32>
    %12 = vector.shape_cast %11 : vector<8xf32> to vector<1x8xf32>
    %c0_9 = arith.constant 0 : index
    %c0_10 = arith.constant 0 : index
    %13 = memref.load %arg4[%c0_9, %c0_10] : memref<1x1xf32, #tpu.memory_space<smem>>
    %14 = vector.broadcast %13 : f32 to vector<1x8xf32>
    %15 = arith.addf %12, %14 : vector<1x8xf32>
    %16 = arith.negf %15 : vector<1x8xf32>
    %17 = math.exp %16 : vector<1x8xf32>
    %cst_11 = arith.constant 1.000000e+00 : f32
    %18 = vector.broadcast %cst_11 : f32 to vector<1x8xf32>
    %19 = arith.addf %18, %17 : vector<1x8xf32>
    %20 = arith.divf %18, %19 : vector<1x8xf32>
    %c0_12 = arith.constant 0 : index
    %c0_13 = arith.constant 0 : index
    %21 = vector.load %arg5[%c0_12, %c0_13] : memref<1x8xf32, #tpu.memory_space<vmem>>, vector<1x8xf32>
    tpu.vector_store %arg5[%c0_12, %c0_13], %20 {strides = array<i32>} : memref<1x8xf32, #tpu.memory_space<vmem>>, vector<1x8xf32>,
    return
  }
}

</mosaic_0001>

<bundles_post_ra>
// kernel: tpu_custom_call.1
= control target key start
LH: loop header
LB: loop body
LE: loop exit
PB: predicated region body
PF: predicated region fallthrough
CT: control target
= control target key end

     0   :  { %vm82_vm0 = vcmask 261120   ;;  %s540_s0 = inlined_call_operand.vmem [shape: f32[32,8], index: 0, kind: input, shape index: {}]   ;;  %s541_s1 = inlined_call_operand.vmem [shape: f32[64,32], index: 1, kind: input, shape index: {}]   ;;  %s542_s2 = inlined_call_operand.vmem [shape: f32[64,1], index: 2, kind: input, shape index: {}]   ;;  %s543_s3 = inlined_call_operand.vmem [shape: f32[64,1], index: 3, kind: input, shape index: {}]   ;;  %s544_s4 = inlined_call_operand.<no memory space> [shape: f32[1,1], index: 4, kind: input, shape index: {}]   ;;  %s545_s5 = inlined_call_operand.hbm [shape: f32[1,8], index: 5, kind: output, shape index: {}]  }
   0x1   :  { %v33_v0 = vld [vmem:[%s540_s0 + $0x18] sm:$0xff]  ;;  %v32_v1 = vld [vmem:[%s540_s0 + $0x10] sm:$0xff]  ;;  %v31_v2 = vld [vmem:[%s540_s0 + $0x8] sm:$0xff] }
   0x2   :  { %344 = vmatprep.subr.mxu0 %v33_v0  ;;  %364 = vmatprep.subr.mxu1 %v33_v0  ;;  %v30_v3 = vld [vmem:[%s540_s0] sm:$0xff]  ;;  %v23_v6 = vld [vmem:[%s541_s1 + $0x8] sm:$0xff]  ;;  %v24_v8 = vld [vmem:[%s541_s1 + $0x10] sm:$0xff] }
   0x3   :  { %345 = vmatpush3.msra.mxu0 %v33_v0  ;;  %368 = vmatpush3.msra.mxu1 %v33_v0  ;;  %v22_v4 = vld [vmem:[%s541_s1] sm:$0xff]  ;;  %v27_v7 = vld [vmem:[%s541_s1 + $0x28] sm:$0xff]  ;;  %v28_v9 = vld [vmem:[%s541_s1 + $0x30] sm:$0xff] }
   0x4   :  { %346 = vmatprep.subr.mxu0 %v32_v1  ;;  %365 = vmatprep.subr.mxu1 %v32_v1  ;;  %v26_v5 = vld [vmem:[%s541_s1 + $0x20] sm:$0xff] }
   0x5   :  { %347 = vmatpush3.msra.mxu0 %v32_v1  ;;  %369 = vmatpush3.msra.mxu1 %v32_v1 }
   0x6   :  { %348 = vmatprep.subr.mxu0 %v31_v2  ;;  %366 = vmatprep.subr.mxu1 %v31_v2 }
   0x7   :  { %349 = vmatpush3.msra.mxu0 %v31_v2  ;;  %370 = vmatpush3.msra.mxu1 %v31_v2 }
   0x8   :  { %350 = vmatprep.subr.mxu0 %v30_v3  ;;  %367 = vmatprep.subr.mxu1 %v30_v3 }
   0x9   :  { %351 = vmatpush3.msra.mxu0 %v30_v3  ;;  %371 = vmatpush3.msra.mxu1 %v30_v3 }
   0xa   :  { %352 = vmatprep.mubr.msk.f32.mxu0 %vm82_vm0, %v22_v4  ;;  %358 = vmatprep.mubr.msk.f32.mxu1 %vm82_vm0, %v26_v5 }
   0xb   :  { %11 = vsyncpa [#allocation4], 0  ;;  %353 = vmatmul.mubr.msk.f32.vlgmr.msra.gmra.mxu0 %vm82_vm0, %v23_v6  ;;  %359 = vmatmul.mubr.msk.f32.vlgmr.msra.gmra.mxu1 %vm82_vm0, %v27_v7  ;;  %v34_v10 = vld [vmem:[%s542_s2] sm:$0xff]  ;;  %v36_v11 = vld [vmem:[%s542_s2 + $0x10] sm:$0xff]  ;;  %v402_v14 = vmov 0   ;;  %vm276_vm1 = vcmask 64512  }
   0xc   :  { %355 = vmatprep.mubr.msk.f32.mxu0 %vm82_vm0, %v24_v8  ;;  %361 = vmatprep.mubr.msk.f32.mxu1 %vm82_vm0, %v28_v9  ;;  %v25_v12 = vld [vmem:[%s541_s1 + $0x18] sm:$0xff]  ;;  %v35_v15 = vld [vmem:[%s542_s2 + $0x8] sm:$0xff]  ;;  %v220_v17 = vld [vmem:[%s543_s3] sm:$0xff]  ;;  %s403_s21 = smov [#allocation3]   ;;  %vm307_vm2 = vcmask 57344  }
   0xd   :  { %v29_v13 = vld [vmem:[%s541_s1 + $0x38] sm:$0xff]  ;;  %374 = vset.pattern.permute.xlu0 %v402_v14  ;;  %375 = vset.pattern.permute.xlu1 %v402_v14  ;;  %v221_v18 = vld [vmem:[%s543_s3 + $0x8] sm:$0xff]  ;;  %v38_v19 = vld [vmem:[%s542_s2 + $0x20] sm:$0xff]  ;;  %s315_s22 = sshll.u32 %s403_s21, 4  ;;  %s316_s22 = int_to_ptr.vmem [resolvable:$true] %s315_s22 }
   0xe   :  { %44 = vperm.xlu0 %374, %v34_v10   ;;  %54 = vperm.xlu1 %375, %v36_v11   ;;  %v37_v16 = vld [vmem:[%s542_s2 + $0x18] sm:$0xff]  ;;  %v222_v20 = vld [vmem:[%s543_s3 + $0x10] sm:$0xff]  ;;  %v39_v21 = vld [vmem:[%s542_s2 + $0x28] sm:$0xff]  ;;  %s380_s23 = scalar_lea.vmem %s316_s22, 16  ;;  %s384_s1 = scalar_lea.vmem %s316_s22, 32 }
   0xf   :  { %356 = vmatmul.mubr.msk.f32.gmra.mxu0 %vm82_vm0, %v25_v12  ;;  %362 = vmatmul.mubr.msk.f32.gmra.mxu1 %vm82_vm0, %v29_v13  ;;  %v223_v22 = vld [vmem:[%s543_s3 + $0x18] sm:$0xff]  ;;  %v40_v23 = vld [vmem:[%s542_s2 + $0x30] sm:$0xff]  ;;  %v224_v24 = vld [vmem:[%s543_s3 + $0x20] sm:$0xff]  ;;  %p381_p0 = scmp.ne.s32.totalorder %s316_s22, %s380_s23  ;;  %p385_p1 = scmp.lt.s32.totalorder %s316_s22, %s316_s22 }
  0x10   :  { %v41_v25 = vld [vmem:[%s542_s2 + $0x38] sm:$0xff]  ;;  %v225_v26 = vld [vmem:[%s543_s3 + $0x28] sm:$0xff]  ;;  %v226_v27 = vld [vmem:[%s543_s3 + $0x30] sm:$0xff]  ;;  %p386_p2 = scmp.lt.s32.totalorder %s384_s1, %s380_s23 }
  0x11   :  { %v227_v28 = vld [vmem:[%s543_s3 + $0x38] sm:$0xff] }
  0x12   :  { %49 = vperm.xlu0 %374, %v35_v15   ;;  %59 = vperm.xlu1 %375, %v37_v16   ;;  %p387_p3 = por %p386_p2, %p385_p1 }
  0x14   :  { %p388_p4 = pnand %p387_p3, %p381_p0 }
  0x16   :  { %230 = vperm.xlu0 %374, %v220_v17   ;;  %235 = vperm.xlu1 %375, %v221_v18  }
  0x1a   :  { %64 = vperm.xlu0 %374, %v38_v19   ;;  %240 = vperm.xlu1 %375, %v222_v20  }
  0x1e   :  { %69 = vperm.xlu0 %374, %v39_v21   ;;  %245 = vperm.xlu1 %375, %v223_v22  }
  0x22   :  { %74 = vperm.xlu0 %374, %v40_v23   ;;  %250 = vperm.xlu1 %375, %v224_v24  }
  0x26   :  { %79 = vperm.xlu0 %374, %v41_v25   ;;  %255 = vperm.xlu1 %375, %v225_v26  }
  0x2a   :  { %260 = vperm.xlu0 %374, %v226_v27   ;;  %265 = vperm.xlu1 %375, %v227_v28  }
  0x89   :  { %v45_v29 = vpop.permute.xlu0 %44  ;;  %v55_v30 = vpop.permute.xlu1 %54 }
  0x8d   :  { %v50_v31 = vpop.permute.xlu0 %49  ;;  %v60_v32 = vpop.permute.xlu1 %59 }
  0x91   :  { %v231_v33 = vpop.permute.xlu0 %230  ;;  %v236_v34 = vpop.permute.xlu1 %235 }
  0x95   :  { %v65_v35 = vpop.permute.xlu0 %64  ;;  %v241_v36 = vpop.permute.xlu1 %240 }
  0x99   :  { %v70_v37 = vpop.permute.xlu0 %69  ;;  %v246_v40 = vpop.permute.xlu1 %245 }
  0x9d   :  { %v75_v48 = vpop.permute.xlu0 %74  ;;  %v251_v53 = vpop.permute.xlu1 %250 }
  0xa1   :  { %v80_v0 = vpop.permute.xlu0 %79  ;;  %v256_v6 = vpop.permute.xlu1 %255 }
  0xa5   :  { %v261_v15 = vpop.permute.xlu0 %260  ;;  %v266_v19 = vpop.permute.xlu1 %265 }
  0xcb   :  { %v354_v38 = vpop.f32.mrf.mxu0  ;;  %v360_v39 = vpop.f32.mrf.mxu1 }
  0xcc   :  { %v179_v41 = vadd.f32 %v354_v38, %v50_v31  ;;  %v199_v54 = vadd.f32 %v360_v39, %v70_v37 }
  0xcd   :  { %v173_v42 = vpop.f32.mrf.mxu0  ;;  %v193_v43 = vpop.f32.mrf.mxu1 }
  0xce   :  { %v174_v44 = vadd.f32 %v173_v42, %v45_v29  ;;  %v213_v45 = vmax.f32 %v179_v41, 0.0  ;;  %v194_v50 = vadd.f32 %v193_v43, %v65_v35  ;;  %v217_v1 = vmax.f32 %v199_v54, 0.0 }
  0xcf   :  { %v357_v46 = vpop.f32.mrf.mxu0  ;;  %v363_v47 = vpop.f32.mrf.mxu1 }
  0xd0   :  { %v212_v49 = vmax.f32 %v174_v44, 0.0  ;;  %v189_v51 = vadd.f32 %v357_v46, %v60_v32  ;;  %v269_v57 = vmul.f32 %v236_v34, %v213_v45  ;;  %v216_v61 = vmax.f32 %v194_v50, 0.0 }
  0xd1   :  { %v183_v52 = vpop.f32.mrf.mxu0  ;;  %v203_v56 = vpop.f32.mrf.mxu1  ;;  %v209_v4 = vadd.f32 %v363_v47, %v80_v0  ;;  %v273_v12 = vmul.f32 %v256_v6, %v217_v1 }
  0xd2   :  { %v268_v55 = vmul.f32 %v231_v33, %v212_v49  ;;  %v215_v58 = vmax.f32 %v189_v51, 0.0  ;;  %v184_v59 = vadd.f32 %v183_v52, %v55_v30  ;;  %v204_v63 = vadd.f32 %v203_v56, %v75_v48 }
  0xd3   :  { %v278_v2 = vsel %vm276_vm1, %v269_v57, 0.0  ;;  %v272_v8 = vmul.f32 %v251_v53, %v216_v61  ;;  %v219_v14 = vmax.f32 %v209_v4, 0.0  ;;  %v286_v21 = vsel %vm276_vm1, %v273_v12, 0.0 }
  0xd4   :  { %v277_v60 = vsel %vm276_vm1, %v268_v55, 0.0  ;;  %v214_v62 = vmax.f32 %v184_v59, 0.0  ;;  %v271_v3 = vmul.f32 %v246_v40, %v215_v58  ;;  %v218_v10 = vmax.f32 %v204_v63, 0.0 }
  0xd5   :  { %v279_v7 = vadd.f32 %v278_v2, %v277_v60  ;;  %v284_v17 = vsel %vm276_vm1, %v272_v8, 0.0  ;;  %v275_v22 = vmul.f32 %v266_v19, %v219_v14  ;;  %v299_v33 = vstv %s544_s4 }
  0xd6   :  { %v270_v5 = vmul.f32 %v241_v36, %v214_v62  ;;  %v282_v13 = vsel %vm276_vm1, %v271_v3, 0.0  ;;  %v274_v18 = vmul.f32 %v261_v15, %v218_v10 }
  0xd7   :  { %v290_v26 = vsel %vm276_vm1, %v275_v22, 0.0 }
  0xd8   :  { %v280_v9 = vsel %vm276_vm1, %v270_v5, 0.0  ;;  %v288_v24 = vsel %vm276_vm1, %v274_v18, 0.0 }
  0xd9   :  { %v281_v11 = vadd.f32 %v280_v9, %v279_v7 }
  0xdb   :  { %v283_v16 = vadd.f32 %v282_v13, %v281_v11 }
  0xdd   :  { %v285_v20 = vadd.f32 %v284_v17, %v283_v16 }
  0xdf   :  { %v287_v23 = vadd.f32 %v286_v21, %v285_v20 }
  0xe1   :  { %v289_v25 = vadd.f32 %v288_v24, %v287_v23 }
  0xe3   :  { %v291_v27 = vadd.f32 %v290_v26, %v289_v25 }
  0xe5   :  { %v292_v28 = vrot.slane %v291_v27, 4 }
  0xe7   :  { %v293_v29 = vadd.f32 %v292_v28, %v291_v27 }
  0xe9   :  { %v294_v30 = vrot.slane %v293_v29, 2 }
  0xeb   :  { %v295_v31 = vadd.f32 %v294_v30, %v293_v29 }
  0xed   :  { %v296_v32 = vrot.slane %v295_v31, 1 }
  0xef   :  { %v297_v34 = vadd.f32 %v296_v32, %v295_v31 }
  0xf1   :  { %v300_v35 = vadd.f32 %v299_v33, %v297_v34 }
  0xf3   :  { %v331_v36 = vmul.f32 -1.442695, %v300_v35 }
  0xf5   :  { %376 = vpow2.f32 %v331_v36 }
 0x102   :  { %v377_v37 = vpop.eup %376 }
 0x103   :  { %v304_v38 = vadd.f32 1.0, %v377_v37 }
 0x105   :  { %378 = vrcp.f32 %v304_v38 }
 0x112   :  { %v379_v39 = vpop.eup %378 }
 0x113   :  { %308 = vst.msk [vmem:[#allocation3] sm:$0x1] %vm307_vm2, %v379_v39 }
 0x114   :  { %391 = shalt.err (!%p388_p4)
}
 0x115   :  { %318 = dma.vmem_to_hbm [thread:$0]  %s316_s22, 16, %s545_s5, [#allocation4]  }
 0x116   :  { %400 = dma.done.wait [#allocation4], 16  }
 0x117   :  { %401 = vsyncadd [#allocation4], 4294967280 }
 0x118   :  { %322 = vsyncpa [#allocation4], 1 }

</bundles_post_ra>
